<compile_context>
chip_gen: v7x
topology: tpu7x:2x2x1
jax: 0.10.0
libtpu: 0.0.40
codegen_flags: <defaults>
</compile_context>

<pallas_src>
import functools

import jax
import jax.numpy as jnp
from jax.experimental import pallas as pl
from jax.experimental.pallas import tpu as pltpu


# ---------------------------------------------------------------------------
# Kernels.  Weight arrives as (K, N): canonical MXU contraction, no transpose.
# ---------------------------------------------------------------------------
def _linear_kernel_single_k(x_ref, w_ref, o_ref):
    # Whole K reduction fits in one tile: no accumulator, no predicates.
    o_ref[...] = jnp.dot(
        x_ref[...], w_ref[...], preferred_element_type=jnp.float32
    ).astype(o_ref.dtype)


def _linear_kernel_multi_k_f32(x_ref, w_ref, o_ref):
    # Output block index is constant along grid axis 2 (K), so o_ref stays
    # VMEM-resident for the whole reduction: accumulate straight into it.
    # Only selected when o_ref.dtype == float32 (full-precision accumulation).
    @pl.when(pl.program_id(2) == 0)
    def _():
        o_ref[...] = jnp.zeros_like(o_ref)

    o_ref[...] += jnp.dot(
        x_ref[...], w_ref[...], preferred_element_type=jnp.float32
    )


def _linear_kernel_multi_k_acc(x_ref, w_ref, o_ref, acc_ref):
    # Generic-dtype path: accumulate in an f32 scratch, cast once at the end.
    @pl.when(pl.program_id(2) == 0)
    def _():
        acc_ref[...] = jnp.zeros_like(acc_ref)

    acc_ref[...] += jnp.dot(
        x_ref[...], w_ref[...], preferred_element_type=jnp.float32
    )

    @pl.when(pl.program_id(2) == pl.num_programs(2) - 1)
    def _():
        o_ref[...] = acc_ref[...].astype(o_ref.dtype)


# ---------------------------------------------------------------------------
# Tiling.
# ---------------------------------------------------------------------------
_TM_CAP = 512      # rows of x / y per block
_TN_CAP = 512      # output features per block (v7x ~24 MiB working-set cap)
_TK_CAP = 2048     # reduction slice per block (grow K first: input-only VMEM)
# Worst case double-buffered f32 working set:
#   2*512*2048 (x) + 2*2048*512 (w) + 2*512*512 (y) floats  ~= 18 MiB.
_VMEM_LIMIT_BYTES = 48 * 1024 * 1024  # > 16/32 MiB scoped defaults, < 64 MiB v7x


def _round_up(v, m):
    return (v + m - 1) // m * m


def _pick_tile(dim, align, cap):
    """Pick a block edge for `dim`.  Returns (tile, padded_dim).

    Prefers zero padding: full-extent blocks for dims <= cap, exact aligned
    divisors for large dims; only truly ragged oversized dims get (minimal)
    padding.
    """
    cap = max(align, cap - cap % align)
    if dim <= cap:
        return dim, dim                      # full-extent block is always legal
    t = cap
    while t >= align:                        # largest aligned divisor <= cap
        if dim % t == 0:
            return t, dim
        t -= align
    nblk = -(-dim // cap)                    # ragged fallback: minimal padding
    t = _round_up(-(-dim // nblk), align)
    return t, _round_up(dim, t)


# ---------------------------------------------------------------------------
# Wrapper: y = x @ weight.T  (nn.Linear(inC, outC, bias=False).forward)
# ---------------------------------------------------------------------------
@functools.partial(
    jax.jit, static_argnames=("tm", "tn", "tk", "allow_xla_fallback")
)
def linear_no_bias(x, weight, *, tm=None, tn=None, tk=None,
                   allow_xla_fallback=True):
    """x: (B, inC), weight: (outC, inC)  ->  (B, outC)."""
    B, inC = x.shape
    outC, inC_w = weight.shape
    assert inC == inC_w, "weight inC must match x inC"
    out_dtype = x.dtype

    tm_, Mp = _pick_tile(B, 8, _TM_CAP) if tm is None else (tm, _round_up(B, tm))
    tn_, Np = (_pick_tile(outC, 128, _TN_CAP) if tn is None
               else (tn, _round_up(outC, tn)))
    tk_, Kp = (_pick_tile(inC, 128, _TK_CAP) if tk is None
               else (tk, _round_up(inC, tk)))

    # Tiny problem (fits one tile): custom-call dispatch + padding overhead
    # dominates any Pallas tiling choice -- let XLA's fused matmul handle it.
    if allow_xla_fallback and (Mp // tm_) * (Np // tn_) * (Kp // tk_) == 1:
        return jnp.dot(x, weight.T)

    # Guarantee >=2 blocks on the 'parallel' axes so both v7x TensorCores work.
    if (Mp // tm_) * (Np // tn_) < 2:
        if tn_ % 256 == 0:
            tn_ //= 2
        elif tm_ % 16 == 0:
            tm_ //= 2

    nm, nn, nk = Mp // tm_, Np // tn_, Kp // tk_

    # Present W as (K, N) once (fused one-pass XLA transpose of a reused
    # weight) so the kernel contraction is MXU-native with no XLU transpose.
    w_t = weight.T

    # Pad only ragged dims (K pads are zeros -> exact; padded M/N rows/cols
    # are sliced off below).  For divisible shapes these are no-ops.
    if Mp != B or Kp != inC:
        x = jnp.pad(x, ((0, Mp - B), (0, Kp - inC)))
    if Kp != inC or Np != outC:
        w_t = jnp.pad(w_t, ((0, Kp - inC), (0, Np - outC)))

    bpe = jnp.dtype(out_dtype).itemsize
    cost = pl.CostEstimate(
        flops=2 * Mp * Np * Kp,
        transcendentals=0,
        # Tiled traffic: x re-read nn times, W re-read nm times, y written once.
        bytes_accessed=bpe * (Mp * Kp * nn + Kp * Np * nm + Mp * Np),
    )

    if nk == 1:
        out_p = pl.pallas_call(
            _linear_kernel_single_k,
            out_shape=jax.ShapeDtypeStruct((Mp, Np), out_dtype),
            grid_spec=pltpu.PrefetchScalarGridSpec(
                num_scalar_prefetch=0,
                grid=(nm, nn),
                in_specs=[
                    pl.BlockSpec((tm_, tk_), lambda i, j: (i, 0)),
                    pl.BlockSpec((tk_, tn_), lambda i, j: (0, j)),
                ],
                out_specs=pl.BlockSpec((tm_, tn_), lambda i, j: (i, j)),
            ),
            compiler_params=pltpu.CompilerParams(
                dimension_semantics=("parallel", "parallel"),
                vmem_limit_bytes=_VMEM_LIMIT_BYTES,
            ),
            cost_estimate=cost,
        )(x, w_t)
    else:
        if out_dtype == jnp.float32:
            kernel, scratch = _linear_kernel_multi_k_f32, []
        else:
            kernel = _linear_kernel_multi_k_acc
            scratch = [pltpu.VMEM((tm_, tn_), jnp.float32)]
        out_p = pl.pallas_call(
            kernel,
            out_shape=jax.ShapeDtypeStruct((Mp, Np), out_dtype),
            grid_spec=pltpu.PrefetchScalarGridSpec(
                num_scalar_prefetch=0,
                grid=(nm, nn, nk),
                in_specs=[
                    pl.BlockSpec((tm_, tk_), lambda i, j, k: (i, k)),
                    pl.BlockSpec((tk_, tn_), lambda i, j, k: (k, j)),
                ],
                out_specs=pl.BlockSpec((tm_, tn_), lambda i, j, k: (i, j)),
                scratch_shapes=scratch,
            ),
            compiler_params=pltpu.CompilerParams(
                dimension_semantics=("parallel", "parallel", "arbitrary"),
                vmem_limit_bytes=_VMEM_LIMIT_BYTES,
            ),
            cost_estimate=cost,
        )(x, w_t)

    if Mp != B or Np != outC:
        out_p = out_p[:B, :outC]
    return out_p


if __name__ == "__main__":
    key = jax.random.PRNGKey(0)
    kx, kw = jax.random.split(key)

    # --- NN(inC=32, outC=64) on a batch of 8 (small demo shape). -------------
    B, inC, outC = 8, 32, 64
    x = jax.random.normal(kx, (B, inC), dtype=jnp.float32)
    bound = 1.0 / (inC ** 0.5)  # nn.Linear default init range
    weight = jax.random.uniform(
        kw, (outC, inC), dtype=jnp.float32, minval=-bound, maxval=bound
    )

    # Force the Pallas single-K path so the kernel is actually exercised.
    y = jax.block_until_ready(linear_no_bias(x, weight, allow_xla_fallback=False))
    y_ref = jnp.dot(x, weight.T, precision=jax.lax.Precision.HIGHEST)
    assert y.shape == (B, outC)
    assert jnp.allclose(y, y_ref, atol=1e-5, rtol=1e-5), "single-K mismatch"

    # Default path for the same tiny shape (XLA fallback) must agree too.
    y_fb = jax.block_until_ready(linear_no_bias(x, weight))
    assert jnp.allclose(y_fb, y_ref, atol=1e-5, rtol=1e-5), "fallback mismatch"

    # --- Multi-K accumulation path (K split across tk=2048 -> nk=2). ---------
    B2, inC2, outC2 = 64, 4096, 256
    x2 = jax.random.normal(kx, (B2, inC2), dtype=jnp.float32)
    w2 = jax.random.normal(kw, (outC2, inC2), dtype=jnp.float32) * 0.02
    y2 = jax.block_until_ready(linear_no_bias(x2, w2))
    y2_ref = jnp.dot(x2, w2.T, precision=jax.lax.Precision.HIGHEST)
    assert jnp.allclose(y2, y2_ref, atol=1e-3, rtol=1e-3), "multi-K mismatch"

    print("KERNEL_OK")
</pallas_src>

<mosaic_0001>
module attributes {stable_mosaic.version = 11 : i64} {
  func.func @_linear_kernel_single_k(%arg0: i32, %arg1: i32, %arg2: memref<8x32xf32, #tpu.memory_space<vmem>>, %arg3: memref<32x64xf32, #tpu.memory_space<vmem>>, %arg4: memref<8x64xf32, #tpu.memory_space<vmem>>) attributes {dimension_semantics = [#tpu.dimension_semantics<parallel>, #tpu.dimension_semantics<parallel>], iteration_bounds = array<i64: 1, 1>, scalar_prefetch = 0 : i64, scratch_operands = 0 : i64, tpu.core_type = #tpu.core_type<tc>, window_params = [{transform_indices = @transform_0, window_bounds = array<i64: 8, 32>}, {transform_indices = @transform_1, window_bounds = array<i64: 32, 64>}, {transform_indices = @transform_2, window_bounds = array<i64: 8, 64>}]} {
    %c0 = arith.constant 0 : index
    %c0_0 = arith.constant 0 : index
    %0 = vector.load %arg2[%c0, %c0_0] : memref<8x32xf32, #tpu.memory_space<vmem>>, vector<8x32xf32>
    %c0_1 = arith.constant 0 : index
    %c0_2 = arith.constant 0 : index
    %1 = vector.load %arg3[%c0_1, %c0_2] : memref<32x64xf32, #tpu.memory_space<vmem>>, vector<32x64xf32>
    %cst = arith.constant dense<0.000000e+00> : vector<8x64xf32>
    %2 = tpu.matmul %0, %1, %cst {dimension_numbers = #tpu.dot_dimension_numbers<[1], [0], [0], [1], [0, 0, 1, 1], [], []>} : vector<8x32xf32>, vector<32x64xf32>, vector<8x64xf32> -> vector<8x64xf32>
    %c0_3 = arith.constant 0 : index
    %c0_4 = arith.constant 0 : index
    %3 = vector.load %arg4[%c0_3, %c0_4] : memref<8x64xf32, #tpu.memory_space<vmem>>, vector<8x64xf32>
    tpu.vector_store %arg4[%c0_3, %c0_4], %2 {strides = array<i32>} : memref<8x64xf32, #tpu.memory_space<vmem>>, vector<8x64xf32>,
    return
  }
  func.func @transform_0(%arg0: i32, %arg1: i32) -> (i32, i32) {
    %c0_i32 = arith.constant 0 : i32
    %c0_i32_0 = arith.constant 0 : i32
    return %arg0, %c0_i32 : i32, i32
  }
  func.func @transform_1(%arg0: i32, %arg1: i32) -> (i32, i32) {
    %c0_i32 = arith.constant 0 : i32
    %c0_i32_0 = arith.constant 0 : i32
    return %c0_i32, %arg1 : i32, i32
  }
  func.func @transform_2(%arg0: i32, %arg1: i32) -> (i32, i32) {
    %c0_i32 = arith.constant 0 : i32
    return %arg0, %arg1 : i32, i32
  }
}

</mosaic_0001>

<bundles_post_ra>
// kernel: linear_no_bias.1
= control target key start
LH: loop header
LB: loop body
LE: loop exit
PB: predicated region body
PF: predicated region fallthrough
CT: control target
= control target key end

     0   :  { %7 = vsyncpa [#allocation3], 0  ;;  %s304_s0 = inlined_call_operand.hbm [shape: f32[8,32], index: 0, kind: input, shape index: {}]   ;;  %s305_s1 = inlined_call_operand.hbm [shape: f32[32,64], index: 1, kind: input, shape index: {}]   ;;  %s306_s2 = inlined_call_operand.hbm [shape: f32[8,64], index: 2, kind: output, shape index: {}]  }
   0x1   :  { %8 = vsyncpa [#allocation6], 0 }
   0x2   :  { %9 = vsyncpa [#allocation4], 0  ;;  %s238_s9 = smov [#allocation2]   ;;  %s239_s11 = smov [#allocation5]  }
   0x3   :  { %s16_s10 = sshll.u32 %s238_s9, 4  ;;  %s25_s12 = sshll.u32 %s239_s11, 4  ;;  %s17_s10 = int_to_ptr.vmem [resolvable:$true] %s16_s10  ;;  %s261_s12 = int_to_ptr.vmem [resolvable:$true] %s25_s12 }
   0x4   :  { %s166_s15 = scalar_lea.hbm %s304_s0, 128 }
   0x5   :  { %p167_p0 = scmp.ne.s32.totalorder %s304_s0, %s166_s15  ;;  %p170_p1 = scmp.lt.u32.totalorder %s166_s15, %s304_s0 }
   0x7   :  { %p172_p2 = pnand %p170_p1, %p167_p0 }
   0x9   :  { %175 = shalt.err (!%p172_p2)
}
   0xa   :  { %s176_s20 = scalar_lea.vmem %s17_s10, 128  ;;  %p181_p4 = scmp.lt.s32.totalorder %s17_s10, %s17_s10 }
   0xb   :  { %p177_p3 = scmp.ne.s32.totalorder %s17_s10, %s176_s20  ;;  %p182_p5 = scmp.lt.s32.totalorder %s176_s20, %s176_s20 }
   0xd   :  { %p183_p6 = por %p182_p5, %p181_p4 }
   0xf   :  { %p184_p7 = pnand %p183_p6, %p177_p3 }
  0x11   :  { %187 = shalt.err (!%p184_p7)
}
  0x12   :  { %19 = dma.hbm_to_vmem [thread:$0]  %s304_s0, 128, %s17_s10, [#allocation3]  }
  0x13   :  { %s188_s25 = scalar_lea.hbm %s305_s1, 512 }
  0x14   :  { %p189_p8 = scmp.ne.s32.totalorder %s305_s1, %s188_s25  ;;  %p192_p9 = scmp.lt.u32.totalorder %s188_s25, %s305_s1 }
  0x16   :  { %p194_p10 = pnand %p192_p9, %p189_p8 }
  0x18   :  { %197 = shalt.err (!%p194_p10)
}
  0x19   :  { %s198_s30 = scalar_lea.vmem %s261_s12, 512  ;;  %p203_p12 = scmp.lt.s32.totalorder %s261_s12, %s261_s12 }
  0x1a   :  { %p199_p11 = scmp.ne.s32.totalorder %s261_s12, %s198_s30  ;;  %p204_p13 = scmp.lt.s32.totalorder %s198_s30, %s198_s30 }
  0x1c   :  { %p205_p0 = por %p204_p13, %p203_p12 }
  0x1e   :  { %p206_p1 = pnand %p205_p0, %p199_p11 }
  0x20   :  { %209 = shalt.err (!%p206_p1)
}
  0x21   :  { %s240_s0 = smov 128   ;;  %s241_s3 = smov 8  }
  0x22   :  { %31 = dma.hbm_to_vmem [thread:$0]  %s305_s1, 512, %s261_s12, [#allocation6], %s240_s0, %s240_s0, %s241_s3  }
  0x23   :  { %232 = dma.done.wait [#allocation3], 128  }
  0x24   :  { %233 = vsyncadd [#allocation3], 4294967168 }
  0x25   :  { %234 = dma.done.wait [#allocation6], 512  }
  0x26   :  { %235 = vsyncadd [#allocation6], 4294966784  ;;  %v242_v0 = vmov 0.0|0.0   ;;  %vm243_vm0 = vmmov 0   ;;  %v244_v1 = vmov 0.0   ;;  %v39_v2 = vld [vmem:[#allocation5] sm:$0xff] }
  0x27   :  { %152 = vmatprep.subr.bf16.mxu0 %v242_v0  ;;  %149 = vmatprep.mubr.msk.f32.mxu0 %vm243_vm0, %v244_v1  ;;  %v40_v3 = vld [vmem:[#allocation5 + $0x8] sm:$0xff]  ;;  %v41_v4 = vld [vmem:[#allocation5 + $0x10] sm:$0xff]  ;;  %v42_v6 = vld [vmem:[#allocation5 + $0x18] sm:$0xff]  ;;  %vm43_vm1 = vcmask 261120   ;;  %s245_s1 = smov [#allocation7]   ;;  %vm117_vm2 = vcmask 523264  }
  0x28   :  { %v153_v5 = vpack.c.bf16 %v40_v3, %v39_v2  ;;  %v156_v7 = vpack.c.bf16 %v42_v6, %v41_v4  ;;  %v38_v8 = vld [vmem:[#allocation2] sm:$0xff]  ;;  %s125_s6 = sshll.u32 %s245_s1, 4  ;;  %s126_s6 = int_to_ptr.vmem [resolvable:$true] %s125_s6 }
  0x29   :  { %s210_s7 = scalar_lea.vmem %s126_s6, 128  ;;  %p215_p3 = scmp.lt.s32.totalorder %s126_s6, %s126_s6 }
  0x2a   :  { %154 = vmatpush3.bf16.msra.mxu0 %v153_v5  ;;  %p211_p2 = scmp.ne.s32.totalorder %s126_s6, %s210_s7  ;;  %p216_p4 = scmp.lt.s32.totalorder %s210_s7, %s210_s7 }
  0x2b   :  { %155 = vmatprep.subr.bf16.mxu0 %v242_v0 }
  0x2c   :  { %p217_p5 = por %p216_p4, %p215_p3 }
  0x2e   :  { %157 = vmatpush3.bf16.msra.mxu0 %v156_v7  ;;  %p218_p6 = pnand %p217_p5, %p211_p2 }
  0x31   :  { %150 = vmatmul.mubr.msk.f32.vlgmr.msra.gmra.mrb[0].mxu0 %vm43_vm1, %v38_v8 }
 0x104   :  { %v113_v9 = vpop.f32.mrb[0].mxu0 }
 0x105   :  { %v151_v10 = vpop.f32.mrb[1].mxu0  ;;  %118 = vst.msk [vmem:[#allocation7] sm:$0xff] %vm117_vm2, %v113_v9 }
 0x106   :  { %221 = shalt.err (!%p218_p6)
}
 0x107   :  { %s222_s10 = scalar_lea.hbm %s306_s2, 128 }
 0x108   :  { %p223_p7 = scmp.ne.s32.totalorder %s306_s2, %s222_s10  ;;  %p226_p8 = scmp.lt.u32.totalorder %s222_s10, %s306_s2 }
 0x10a   :  { %p228_p9 = pnand %p226_p8, %p223_p7 }
 0x10c   :  { %231 = shalt.err (!%p228_p9)
}
 0x10d   :  { %128 = dma.vmem_to_hbm [thread:$0]  %s126_s6, 128, %s306_s2, [#allocation4]  }
 0x10e   :  { %236 = dma.done.wait [#allocation4], 128  }
 0x10f   :  { %237 = vsyncadd [#allocation4], 4294967168 }
 0x110   :  { %132 = vsyncpa [#allocation3], 1 }
 0x111   :  { %133 = vsyncpa [#allocation6], 1 }
 0x112   :  { %134 = vsyncpa [#allocation4], 1 }

</bundles_post_ra>
